<compile_context>
chip_gen: v7x
topology: tpu7x:2x2x1
jax: 0.10.0
libtpu: 0.0.40
codegen_flags: <defaults>
</compile_context>

<pallas_src>
import jax
import jax.numpy as jnp
import numpy as np
from jax import lax
from jax.experimental import pallas as pl
from jax.experimental.pallas import tpu as pltpu


def _round_up(x, m):
    return (x + m - 1) // m * m


def _nconv_kernel(x_ref, a_ref, o_ref):
    # x_ref: (N, tl), a_ref: (N, M) in compute dtype; o_ref: (M, tl) f32.
    # out[m, l] = sum_n a[n, m] * x[n, l]  ==  A^T @ X  -- one MXU matmul.
    o_ref[...] = lax.dot_general(
        a_ref[...], x_ref[...],
        dimension_numbers=(((0,), (0,)), ((), ())),
        preferred_element_type=jnp.float32)


def _pick_lane_tile(L, N, M, in_itemsize, vmem_budget_bytes):
    """Pick the lane tile `tl` (multiple of 128) and the padded lane extent.

    Priorities:
      1. fit the double-buffered working set inside `vmem_budget_bytes`
         (kept <= ~12 MiB by default: under v5e's 16 MiB scoped default and
         v7x's 64 MiB physical VMEM);
      2. >= 2 lane blocks whenever L >= 256, so v7x's two TensorCores can split
         the "parallel" lane axis (no-op on single-TC v5e/v6e);
      3. within (1)/(2), the largest possible tile: big lane tiles amortize the
         ~0.35 us per-grid-step overhead and keep DMA at streaming rates.
    """
    n_sub = _round_up(max(N, 1), 8)         # x sublane extent (padded)
    m_sub = _round_up(max(M, 1), 8)         # out sublane extent (padded)
    m_lane = _round_up(max(M, 1), 128)      # A lane extent (padded)
    out_itemsize = 4                        # output block stays f32

    a_bytes = 2 * n_sub * m_lane * in_itemsize                 # resident A (conservatively x2)
    per_lane = 2 * n_sub * in_itemsize + 2 * m_sub * out_itemsize  # dbl-buffered x-in + out

    avail = max(vmem_budget_bytes - a_bytes, 128 * per_lane)
    tl_budget = max((avail // per_lane) // 128 * 128, 128)

    l_pad = _round_up(max(L, 1), 128)
    tl = min(tl_budget, l_pad)
    if l_pad >= 256:
        # Force at least two lane blocks (v7x core split).
        tl = min(tl, max(128, (l_pad // 2) // 128 * 128))
    l_pad = _round_up(l_pad, tl)
    return tl, l_pad


def pallas_nconv_slab(x_nl, A, *, compute_dtype=jnp.bfloat16,
                      vmem_budget_bytes=12 << 20):
    """Slab form: x_nl (N, L) x A (N, M) -> (M, L), f32.

    Keep activations in this (contraction-on-sublanes, lane-dense) layout across
    repeated nconv hops inside a gcn block and transpose once on entry/exit.
    """
    N, L = x_nl.shape
    assert A.shape[0] == N, (A.shape, N)
    M = A.shape[1]

    in_itemsize = jnp.dtype(compute_dtype).itemsize
    tl, l_pad = _pick_lane_tile(L, N, M, in_itemsize, vmem_budget_bytes)

    x_c = x_nl.astype(compute_dtype)
    if l_pad != L:
        x_c = jnp.pad(x_c, ((0, 0), (0, l_pad - L)))
    a_c = A.astype(compute_dtype)

    n_blocks = l_pad // tl
    kwargs = {}
    if n_blocks > 1:
        kwargs["compiler_params"] = pltpu.CompilerParams(
            dimension_semantics=("parallel",))

    out = pl.pallas_call(
        _nconv_kernel,
        out_shape=jax.ShapeDtypeStruct((M, l_pad), jnp.float32),
        grid=(n_blocks,),
        in_specs=[
            pl.BlockSpec((N, tl), lambda j: (0, j)),   # x slab, tiled along lanes
            pl.BlockSpec((N, M), lambda j: (0, 0)),    # adjacency, resident
        ],
        out_specs=pl.BlockSpec((M, tl), lambda j: (0, j)),
        cost_estimate=pl.CostEstimate(
            flops=2 * N * M * l_pad,
            transcendentals=0,
            bytes_accessed=(N * l_pad + N * M) * in_itemsize + M * l_pad * 4),
        **kwargs,
    )(x_c, a_c)

    if l_pad != L:
        out = out[:, :L]
    return out


def pallas_nconv(x, A, *, compute_dtype=jnp.bfloat16, vmem_budget_bytes=12 << 20):
    """einsum('btnf,nm->btmf'): x (B,T,N,F), A (N,M) -> (B,T,M,F)."""
    B, T, N, F = x.shape
    assert A.shape[0] == N, (A.shape, N)
    M = A.shape[1]
    L = B * T * F

    # (B,T,N,F) -> (N, L): contraction axis on sublanes, everything else lane-dense.
    # For multi-hop gcn blocks, do this once and call pallas_nconv_slab per hop.
    x_nl = jnp.transpose(x, (2, 0, 1, 3)).reshape(N, L)
    out_nl = pallas_nconv_slab(x_nl, A, compute_dtype=compute_dtype,
                               vmem_budget_bytes=vmem_budget_bytes)

    # (M, B*T*F) -> (B, T, M, F)  (matches torch einsum output; .contiguous() is a no-op here)
    return out_nl.reshape(M, B, T, F).transpose(1, 2, 0, 3).astype(x.dtype)


def ref_nconv(x, A):
    return jnp.einsum("btnf,nm->btmf", x, A, precision=lax.Precision.HIGHEST)


if __name__ == "__main__":
    key = jax.random.PRNGKey(0)
    k1, k2, k3, k4, k5 = jax.random.split(key, 5)

    # Case 1: square, row-normalized adjacency; L = 2*8*32 = 512 -> tl=256, grid=(2,).
    B, T, N, F = 2, 8, 8, 32
    x = jax.random.normal(k1, (B, T, N, F), dtype=jnp.float32)
    a = jnp.abs(jax.random.normal(k2, (N, N), dtype=jnp.float32))
    a = a / jnp.sum(a, axis=1, keepdims=True)
    out = jax.block_until_ready(pallas_nconv(x, a))
    assert out.shape == (B, T, N, F), out.shape
    np.testing.assert_allclose(np.asarray(out), np.asarray(ref_nconv(x, a)),
                               atol=5e-2, rtol=5e-2)

    # Case 2: rectangular A (N input nodes -> M output nodes), bf16 compute path.
    M = 16
    a2 = jax.random.normal(k3, (N, M), dtype=jnp.float32)
    out2 = jax.block_until_ready(pallas_nconv(x, a2))
    assert out2.shape == (B, T, M, F), out2.shape
    np.testing.assert_allclose(np.asarray(out2), np.asarray(ref_nconv(x, a2)),
                               atol=5e-2, rtol=5e-2)

    # Case 3: larger L with a tight VMEM budget to exercise the multi-block
    # "parallel" path (L = 4*16*64 = 4096 -> tl=2048, grid=(2,)).
    B3, T3, F3 = 4, 16, 64
    x3 = jax.random.normal(k4, (B3, T3, N, F3), dtype=jnp.float32)
    out3 = jax.block_until_ready(pallas_nconv(x3, a, vmem_budget_bytes=1 << 20))
    assert out3.shape == (B3, T3, N, F3), out3.shape
    np.testing.assert_allclose(np.asarray(out3), np.asarray(ref_nconv(x3, a)),
                               atol=5e-2, rtol=5e-2)

    # Case 4: ragged L (B*T*F = 3*5*7 = 105, not a multiple of 128) -> zero-pad path,
    # and the f32 compute path for tight accuracy.
    B4, T4, F4 = 3, 5, 7
    x4 = jax.random.normal(k5, (B4, T4, N, F4), dtype=jnp.float32)
    out4 = jax.block_until_ready(pallas_nconv(x4, a, compute_dtype=jnp.float32))
    assert out4.shape == (B4, T4, N, F4), out4.shape
    np.testing.assert_allclose(np.asarray(out4), np.asarray(ref_nconv(x4, a)),
                               atol=1e-3, rtol=1e-3)

    print("KERNEL_OK")
</pallas_src>

<mosaic_0001>
module attributes {stable_mosaic.version = 11 : i64} {
  func.func @_nconv_kernel(%arg0: i32, %arg1: memref<8x256xbf16, #tpu.memory_space<vmem>>, %arg2: memref<8x8xbf16, #tpu.memory_space<vmem>>, %arg3: memref<8x256xf32, #tpu.memory_space<vmem>>) attributes {dimension_semantics = [#tpu.dimension_semantics<parallel>], iteration_bounds = array<i64: 2>, scalar_prefetch = 0 : i64, scratch_operands = 0 : i64, tpu.core_type = #tpu.core_type<tc>, window_params = [{transform_indices = @transform_0, window_bounds = array<i64: 8, 256>}, {pipeline_mode = #tpu.pipeline_mode<synchronous>, transform_indices = @transform_1, window_bounds = array<i64: 8, 8>}, {transform_indices = @transform_2, window_bounds = array<i64: 8, 256>}]} {
    %c0 = arith.constant 0 : index
    %c0_0 = arith.constant 0 : index
    %0 = vector.load %arg2[%c0, %c0_0] : memref<8x8xbf16, #tpu.memory_space<vmem>>, vector<8x8xbf16>
    %c0_1 = arith.constant 0 : index
    %c0_2 = arith.constant 0 : index
    %1 = vector.load %arg1[%c0_1, %c0_2] : memref<8x256xbf16, #tpu.memory_space<vmem>>, vector<8x256xbf16>
    %cst = arith.constant dense<0.000000e+00> : vector<8x256xf32>
    %2 = tpu.matmul %0, %1, %cst {dimension_numbers = #tpu.dot_dimension_numbers<[0], [0], [1], [1], [0, 1, 1, 1], [], []>} : vector<8x8xbf16>, vector<8x256xbf16>, vector<8x256xf32> -> vector<8x256xf32>
    %c0_3 = arith.constant 0 : index
    %c0_4 = arith.constant 0 : index
    %3 = vector.load %arg3[%c0_3, %c0_4] : memref<8x256xf32, #tpu.memory_space<vmem>>, vector<8x256xf32>
    tpu.vector_store %arg3[%c0_3, %c0_4], %2 {strides = array<i32>} : memref<8x256xf32, #tpu.memory_space<vmem>>, vector<8x256xf32>,
    return
  }
  func.func @transform_0(%arg0: i32) -> (i32, i32) {
    %c0_i32 = arith.constant 0 : i32
    %c0_i32_0 = arith.constant 0 : i32
    return %c0_i32, %arg0 : i32, i32
  }
  func.func @transform_1(%arg0: i32) -> (i32, i32) {
    %c0_i32 = arith.constant 0 : i32
    %c0_i32_0 = arith.constant 0 : i32
    %c0_i32_1 = arith.constant 0 : i32
    return %c0_i32, %c0_i32_0 : i32, i32
  }
  func.func @transform_2(%arg0: i32) -> (i32, i32) {
    %c0_i32 = arith.constant 0 : i32
    %c0_i32_0 = arith.constant 0 : i32
    return %c0_i32, %arg0 : i32, i32
  }
}

</mosaic_0001>

<bundles_post_ra>
// kernel: tpu_custom_call.1
= control target key start
LH: loop header
LB: loop body
LE: loop exit
PB: predicated region body
PF: predicated region fallthrough
CT: control target
= control target key end

     0   :  { %7 = vsyncpa [#allocation3], 0  ;;  %s781_s0 = inlined_call_operand.hbm [shape: bf16[8,512], index: 0, kind: input, shape index: {}]   ;;  %s782_s1 = inlined_call_operand.hbm [shape: bf16[8,8], index: 1, kind: input, shape index: {}]   ;;  %s783_s2 = inlined_call_operand.hbm [shape: f32[8,512], index: 2, kind: output, shape index: {}]  }
   0x1   :  { %9 = vsyncpa [#allocation3 + $0x1], 0 }
   0x2   :  { %10 = vsyncpa [#allocation6], 0 }
   0x3   :  { %11 = vsyncpa [#allocation4], 0 }
   0x4   :  { %13 = vsyncpa [#allocation4 + $0x1], 0  ;;  %s579_s9 = smov 0   ;;  %s581_s10 = smov 0  }
   0x5   :  { %s583_s11 = smov 0   ;;  %s585_s12 = smov 0  }
   0x6 LB: > { %s600_s13 = sadd.s32 4294967295, %s558_s12   ;;  %s348_s14 = sadd.s32 4294967294, %s558_s12   ;;  %s558_s12 = sphi %s585_s12, %s807_s12   ;;  %s554_s11 = sphi %s583_s11, %s806_s11   ;;  %s550_s10 = sphi %s581_s10, %s805_s10   ;;  %s546_s9 = sphi %s579_s9, %s804_s9  }
   0x7   : > { %p39_p0 = scmp.ne.s32.totalorder %s550_s10, %s546_s9  ;;  %p784_p1 = scmp.eq.s32.totalorder %s600_s13, 0 }
   0x8   : > { %p90_p3 = scmp.eq.s32.totalorder %s348_s14, 1  ;;  %p349_p5 = scmp.ge.s32.totalorder %s558_s12, 1 }
   0x9   : > { %p609_p4 = por %p784_p1, %p39_p0  ;;  %p97_p7 = scmp.lt.s32.totalorder %s558_s12, 3 }
   0xa   : > { %p614_p6 = por %p90_p3, %p39_p0  ;;  %s560_s18 = smov [#allocation5]  }
   0xb   : > { %s787_s15 = scalar_select %p609_p4, 1, 0 }
   0xc   : > { %s788_s16 = scalar_select %p614_p6, 1, 0 }
   0xd   : > { %p619_p8 = pnand %p349_p5, %p97_p7  ;;  %s110_s19 = sshll.u32 %s560_s18, 4  ;;  %s111_s19 = int_to_ptr.vmem [resolvable:$true] %s110_s19 }
   0xe   : > { %s627_s20 = sadd.s32 1, %s558_s12   ;;  %s26_s24 = sadd.s32 1, %s554_s11 }
   0xf   : > { %s789_s17 = scalar_select %p619_p8, 1, 0 }
  0x10   : > { %p378_p10 = pneg %p619_p8  ;;  %s23_s22 = ssub.s32 %s558_s12, %s627_s20 }
  0x11   : > { %p637_p12 = scmp.eq.s32.totalorder %s23_s22, 0  ;;  %s430_s27 = scalar_lea.hbm %s782_s1, 64 }
  0x12   : > { %p631_p11 = pnand %p378_p10, %p784_p1  ;;  %p431_p0 = scmp.ne.s32.totalorder %s782_s1, %s430_s27 }
  0x13   : > { %s791_s23 = scalar_select %p637_p12, 1, 0 }
  0x14   : > { %p432_p3 = pneg %p631_p11  ;;  %p437_p10 = scmp.lt.u32.totalorder %s430_s27, %s782_s1 }
  0x16   : > { %p433_p5 = pnand %p432_p3, %p431_p0 }
  0x18   : > { %p434_p7 = pneg %p433_p5 }
  0x1a   : > { %p439_p9 = pnand %p437_p10, %p434_p7 }
  0x1c   : > { %442 = shalt.err (!%p439_p9)
}
  0x1d   : > { %s443_s4 = scalar_lea.vmem %s111_s19, 64  ;;  %p451_p6 = scmp.lt.s32.totalorder %s111_s19, %s111_s19 }
  0x1e   : > { %p444_p1 = scmp.ne.s32.totalorder %s111_s19, %s443_s4  ;;  %p452_p4 = scmp.lt.s32.totalorder %s443_s4, %s443_s4 }
  0x20   : > { %p446_p2 = pnand %p444_p1, %p432_p3  ;;  %p453_p8 = por %p452_p4, %p451_p6 }
  0x22   : > { %p447_p13 = pneg %p446_p2 }
  0x24   : > { %p454_p12 = pnand %p453_p8, %p447_p13 }
  0x26   : > { %457 = shalt.err (!%p454_p12)
}
  0x27   : > { %381 = dma.hbm_to_vmem [thread:$0]  (!%p631_p11), %s782_s1, 64, %s111_s19, [#allocation6]  }
  0x28   : > { %p792_p1 = scmp.ne.s32.totalorder %s791_s23, 0  ;;  %p34_p2 = scmp.eq.s32.totalorder %s558_s12, 0 }
  0x29   : > { %p793_p4 = scmp.ne.s32.totalorder %s554_s11, %s550_s10  ;;  %p794_p6 = scmp.eq.s32.totalorder %s600_s13, 1 }
  0x2a   : > { %s663_s7 = scalar_select %p792_p1, %s554_s11, %s26_s24  }
  0x2b   : > { %p671_p8 = por %p794_p6, %p793_p4  ;;  %p391_p9 = scmp.lt.s32.totalorder %s558_s12, 2 }
  0x2c   : > { %s121_s14 = sand.u32 1, %s554_s11   ;;  %p796_p12 = pmov %p793_p4 }
  0x2d   : > { %s352_s18 = sshll.u32 %s121_s14, 3  ;;  %s368_s21 = sshll.u32 %s558_s12, 7 }
  0x2e   : > { %p35_p13 = por %p34_p2, %p796_p12  ;;  %s684_s19 = scalar_lea.hbm %s781_s0, %s368_s21 }
  0x2f   : > { %s125_s23 = scalar_lea.vmem [#allocation2], %s352_s18  ;;  %s122_s27 = scalar_lea.sflag [#allocation3], %s121_s14 }
  0x30   : > { %s133_s24 = sshll.u32 %s125_s23, 4  ;;  %p686_p11 = pnand %p391_p9, %p35_p13  ;;  %s690_s24 = int_to_ptr.vmem [resolvable:$true] %s133_s24 }
  0x31   : > { %s458_s28 = scalar_lea.hbm %s684_s19, 128  ;;  %s463_s3 = scalar_lea.hbm %s781_s0, 256 }
  0x32   : > { %p459_p0 = scmp.ne.s32.totalorder %s684_s19, %s458_s28  ;;  %p460_p3 = pneg %p686_p11 }
  0x33   : > { %p464_p10 = scmp.lt.u32.totalorder %s684_s19, %s781_s0  ;;  %p465_p1 = scmp.lt.u32.totalorder %s463_s3, %s458_s28 }
  0x34   : > { %p461_p5 = pnand %p460_p3, %p459_p0  ;;  %p467_p4 = scmp.lt.u32.totalorder %s458_s28, %s684_s19 }
  0x35   : > { %p466_p2 = por %p465_p1, %p464_p10 }
  0x36   : > { %p462_p7 = pneg %p461_p5 }
  0x37   : > { %p468_p6 = por %p467_p4, %p466_p2 }
  0x39   : > { %p469_p9 = pnand %p468_p6, %p462_p7 }
  0x3b   : > { %472 = shalt.err (!%p469_p9)
}
  0x3c   : > { %s473_s6 = scalar_lea.vmem %s690_s24, 128  ;;  %s561_s14 = smov [#allocation2]  }
  0x3d   : > { %p474_p12 = scmp.ne.s32.totalorder %s690_s24, %s473_s6  ;;  %s478_s18 = sshll.u32 %s561_s14, 4  ;;  %s479_s18 = int_to_ptr.vmem [resolvable:$false] %s478_s18 }
  0x3e   : > { %s480_s21 = scalar_lea.vmem %s479_s18, 256  ;;  %p481_p5 = scmp.lt.s32.totalorder %s690_s24, %s479_s18 }
  0x3f   : > { %p476_p13 = pnand %p474_p12, %p460_p3  ;;  %p482_p10 = scmp.lt.s32.totalorder %s480_s21, %s473_s6 }
  0x41   : > { %p477_p0 = pneg %p476_p13  ;;  %p483_p1 = por %p482_p10, %p481_p5 }
  0x43   : > { %p484_p2 = pnand %p483_p1, %p477_p0 }
  0x45   : > { %487 = shalt.err (!%p484_p2)
}
  0x46   : > { %385 = dma.hbm_to_vmem [thread:$0]  (!%p686_p11), %s684_s19, 128, %s690_s24, %s122_s27  }
  0x47   : > { %p798_p7 = scmp.ne.s32.totalorder %s789_s17, 0 }
  0x48   : > { %s720_s22 = sand.u32 (!%p798_p7), 1, %s550_s10   ;;  %p799_p3 = scmp.ne.s32.totalorder (!%p798_p7), %s787_s15, 0 }
  0x49   : > { %142 = sbr.rel (%p798_p7) target bundleno = 416 (0x1a0), region = 28  ;;  %s356_s25 = sshll.u32 (!%p798_p7), %s720_s22, 3 }
  0x4a   : > { %s145_s23 = scalar_lea.sflag (!%p798_p7), [#allocation3], %s720_s22  ;;  %s148_s28 = scalar_lea.vmem (!%p798_p7), [#allocation2], %s356_s25 }
  0x50   : > { %533 = dma.done.wait (%p799_p3), %s145_s23, 128  }
  0x51   : > { %535 = vsyncadd (%p799_p3), %s145_s23, 4294967168  ;;  %p800_p4 = scmp.eq.s32.totalorder %s600_s13, 0 }
  0x53   : > { %537 = dma.done.wait (%p800_p4), [#allocation6], 64   ;;  %p801_p11 = pmov %p800_p4 }
  0x54   : > { %v562_v0 = vmov 0   ;;  %v176_v1 = vld [vmem:[#allocation5] sm:$0xf]  ;;  %v177_v2 = vld [vmem:[%s148_s28] sm:$0xff]  ;;  %vm203_vm0 = vcmask 1043456   ;;  %vm199_vm1 = vcmask 64512  }
  0x55   : > { %539 = vsyncadd (%p801_p11), [#allocation6], 4294967232  ;;  %242 = vmatprep.mubr.bf16.mxu0 %v562_v0  ;;  %178 = vxpose.xlu0.c.b16.start.end [1/1] (short) (narrow) %v176_v1, 16  ;;  %v360_v3 = vcombine.high %v177_v2, %v177_v2  ;;  %v359_v4 = vcombine.low %v177_v2, %v177_v2  ;;  %s358_s15 = sshll.u32 %s720_s22, 4  ;;  %s369_s24 = sshll.u32 %s600_s13, 8 }
  0x56   : > { %s172_s17 = scalar_lea.vmem [#allocation7], %s358_s15  ;;  %s739_s29 = scalar_lea.hbm %s783_s2, %s369_s24 }
  0x57   : > { %361 = vmatprep.subr.msk.bf16.mxu0 %vm203_vm0, %v360_v3  ;;  %v205_v5 = vsel %vm203_vm0, %v359_v4, 0  ;;  %s268_s19 = sshll.u32 %s172_s17, 4  ;;  %s254_s30 = scalar_lea.sflag [#allocation4], %s720_s22  ;;  %s734_s19 = int_to_ptr.vmem [resolvable:$true] %s268_s19 }
  0x58   : > { %211 = vmatpush1.bf16.msra.mxu0 %v205_v5  ;;  %s488_s3 = scalar_lea.vmem %s734_s19, 256  ;;  %s563_s13 = smov [#allocation7]  }
  0x59   : > { %p489_p6 = scmp.ne.s32.totalorder %s734_s19, %s488_s3  ;;  %s492_s4 = sshll.u32 %s563_s13, 4  ;;  %s493_s4 = int_to_ptr.vmem [resolvable:$false] %s492_s4 }
  0x5a   : > { %s494_s5 = scalar_lea.vmem %s493_s4, 512  ;;  %p495_p13 = scmp.lt.s32.totalorder %s734_s19, %s493_s4 }
  0x5b   : > { %p490_p9 = pnand %p489_p6, %p671_p8  ;;  %p496_p0 = scmp.lt.s32.totalorder %s494_s5, %s488_s3 }
  0x5d   : > { %p491_p12 = pneg %p490_p9  ;;  %p497_p5 = por %p496_p0, %p495_p13 }
  0x5f   : > { %p498_p10 = pnand %p497_p5, %p491_p12 }
  0xbb   : > { %v186_v6 = vpop.trf.xlu0 }
  0xbc   : > { %362 = vmatmul.mubr.msk.bf16.vlgmr.msra.gmra.mrb[0].mxu0 %vm199_vm1, %v186_v6 }
 0x18f   : > { %v244_v7 = vpop.f32.mrb[0].mxu0 }
 0x190   : > { %251 = vst [vmem:[%s172_s17] sm:$0xff] %v244_v7  ;;  %v246_v8 = vpop.f32.mrb[1].mxu0 }
 0x191   : > { %252 = vst [vmem:[%s172_s17 + $0x8] sm:$0xff] %v246_v8  ;;  %v248_v9 = vpop.f32.mrb[2].mxu0 }
 0x192   : > { %v249_v10 = vpop.f32.mrb[3].mxu0 }
 0x193   : > { %501 = shalt.err (!%p498_p10)
}
 0x194   : > { %s502_s6 = scalar_lea.hbm %s739_s29, 256  ;;  %s506_s21 = scalar_lea.hbm %s783_s2, 512 }
 0x195   : > { %p503_p1 = scmp.ne.s32.totalorder %s739_s29, %s502_s6  ;;  %p507_p3 = scmp.lt.u32.totalorder %s739_s29, %s783_s2 }
 0x196   : > { %p508_p4 = scmp.lt.u32.totalorder %s506_s21, %s502_s6  ;;  %p510_p6 = scmp.lt.u32.totalorder %s502_s6, %s739_s29 }
 0x197   : > { %p504_p2 = pnand %p503_p1, %p671_p8 }
 0x198   : > { %p509_p11 = por %p508_p4, %p507_p3 }
 0x199   : > { %p505_p7 = pneg %p504_p2 }
 0x19a   : > { %p511_p9 = por %p510_p6, %p509_p11 }
 0x19c   : > { %p512_p12 = pnand %p511_p9, %p505_p7 }
 0x19e   : > { %515 = shalt.err (!%p512_p12)
}
 0x19f   : > { %376 = dma.vmem_to_hbm [thread:$0]  (%p671_p8), %s734_s19, 256, %s739_s29, %s254_s30  }
 0x1a0 PF: > { %s280_s23 = sand.u32 1, %s546_s9   ;;  %p802_p13 = scmp.ne.s32.totalorder %s788_s16, 0 }
 0x1a1   : > { %p803_p0 = scmp.ge.s32.totalorder %s558_s12, 2  ;;  %s281_s28 = scalar_lea.sflag [#allocation4], %s280_s23 }
 0x1a3   : > { %p387_p5 = pnand %p803_p0, %p802_p13 }
 0x1a5   : > { %541 = dma.done.wait (!%p387_p5), %s281_s28, 256  }
 0x1a6   : > { %543 = vsyncadd (!%p387_p5), %s281_s28, 4294967040  ;;  %p16_p10 = scmp.ge.s32.totalorder %s627_s20, 4   ;;  %s804_s9 = smov %s550_s10 }
 0x1a7   : > { %s805_s10 = smov %s554_s11  ;;  %s806_s11 = smov %s663_s7 }
 0x1a8   : > { %s807_s12 = smov %s627_s20  ;;  %18 = sbr.rel (!%p16_p10) target bundleno = 6 (0x6), region = 77 }
 0x1af   :  { %286 = vsyncpa [#allocation3], 1 }
 0x1b0   :  { %288 = vsyncpa [#allocation3 + $0x1], 1 }
 0x1b1   :  { %289 = vsyncpa [#allocation6], 1 }
 0x1b2   :  { %290 = vsyncpa [#allocation4], 1 }
 0x1b3   :  { %292 = vsyncpa [#allocation4 + $0x1], 1 }

</bundles_post_ra>
